<compile_context>
chip_gen: v6e
topology: v6e:2x2x1
jax: 0.10.0
libtpu: 0.0.40
codegen_flags: <defaults>
</compile_context>

<pallas_src>
import jax
import jax.numpy as jnp
import numpy as np
from jax import lax
from jax.experimental import pallas as pl
from jax.experimental.pallas import tpu as pltpu


def _embedding_bag_kernel(idx_ref, bounds_ref, table_ref, out_ref):
    # idx_ref    : VMEM (P, 1)    int32, P = TB*L (flat positions p = b_local*L + l)
    # bounds_ref : VMEM (R, 2)    int32, R = W*TB, rows ordered r = w*TB + b_local,
    #                                   columns = [start, end) in global tile positions
    # table_ref  : VMEM (V, E)    float32
    # out_ref    : VMEM (TB, W*E) float32 (lane-dense slab)
    R = bounds_ref.shape[0]
    P = idx_ref.shape[0]
    V, E = table_ref.shape
    TB = out_ref.shape[0]
    W = R // TB

    # Block-diagonal bag assignment over global tile positions (one fused range compare).
    starts_g = bounds_ref[:, 0:1]                                    # (R, 1)
    ends_g = bounds_ref[:, 1:2]                                      # (R, 1)
    pos = lax.broadcasted_iota(jnp.int32, (1, P), 1)                 # (1, P)
    assign = jnp.logical_and(pos >= starts_g, pos < ends_g)
    assign = assign.astype(jnp.bfloat16)                             # (R, P)  exact 0/1

    # One-hot of token ids, vocab on the lane axis.
    v_iota = lax.broadcasted_iota(jnp.int32, (1, V), 1)              # (1, V)
    onehot = (idx_ref[...] == v_iota).astype(jnp.bfloat16)           # (P, V)  exact 0/1

    # Stage 1: per-(bag, batch) vocab counts — one (R, P)x(P, V) bf16 MXU matmul,
    # f32 accumulate (bit-exact for 0/1 operands, counts <= L).
    counts = jnp.dot(assign, onehot, preferred_element_type=jnp.float32)      # (R, V)

    # Stage 2: per-bag embedding sums — one (R, V)x(V, E) f32 MXU matmul; the table stays
    # at full precision and is NOT broadcast per batch element.
    sums = jnp.dot(counts, table_ref[...], preferred_element_type=jnp.float32)  # (R, E)

    # Bag lengths straight from the bounds; EmbeddingBag('mean') returns 0 for empty bags.
    lengths = (ends_g - starts_g).astype(jnp.float32)                # (R, 1)
    scale = jnp.where(lengths > 0.0, 1.0 / jnp.maximum(lengths, 1.0), 0.0)
    mean = sums * scale                                              # (R, E)

    # Lane-dense slab: rows are w-major (r = w*TB + b_local), so bag w is the contiguous
    # row block [w*TB, (w+1)*TB).  Static slices + lane concat -> one full-lane store.
    slab = jnp.concatenate(
        [mean[w * TB:(w + 1) * TB, :] for w in range(W)], axis=1)    # (TB, W*E)
    out_ref[...] = slab.astype(out_ref.dtype)


def embedding_forward(indices, offsets, table):
    """indices: (B, L) int32, offsets: (B, W) int32, table: (V, E) f32 -> (B, W, E) f32."""
    B, L = indices.shape
    W = offsets.shape[1]
    V, E = table.shape

    indices = indices.astype(jnp.int32)
    offsets = offsets.astype(jnp.int32)

    # Batch tile size.  At toy sizes per-tile compute is far below the ~0.35us grid-step
    # cost, so keep one step; for larger B, tile by 8 so the "parallel" axis can shard
    # tiles across v7x's two TensorCores.
    if B <= 8:
        TB = B
    else:
        TB = next(t for t in (8, 4, 2, 1) if B % t == 0)
    T = B // TB
    grid = (T,)

    # --- Wrapper-side metadata prep (tiny, plain XLA on HBM) -------------------------
    # Bag boundaries: starts = offsets, bag w ends at offsets[w+1] (last bag ends at L).
    starts = offsets                                                      # (B, W)
    ends = jnp.concatenate(
        [offsets[:, 1:], jnp.full((B, 1), L, dtype=jnp.int32)], axis=1)   # (B, W)

    # Shift to global tile positions (p = b_local*L + l) and reorder rows to
    # [tile, w, b_local] so each tile's block is contiguous and w-major.
    b_local = (jnp.arange(B, dtype=jnp.int32) % TB) * L                   # (B,)
    starts_g = starts + b_local[:, None]
    ends_g = ends + b_local[:, None]

    def to_bd(x):  # (B, W) -> (B*W,) ordered [tile, w, b_local]
        return x.reshape(T, TB, W).transpose(0, 2, 1).reshape(B * W)

    bounds_bd = jnp.stack([to_bd(starts_g), to_bd(ends_g)], axis=1)       # (B*W, 2)

    # Flat token ids, one per row so the kernel builds the one-hot directly in 2-D.
    idx_flat = indices.reshape(B * L, 1)                                  # (B*L, 1)
    # ---------------------------------------------------------------------------------

    out = pl.pallas_call(
        _embedding_bag_kernel,
        out_shape=jax.ShapeDtypeStruct((B, W * E), table.dtype),
        grid=grid,
        in_specs=[
            pl.BlockSpec((TB * L, 1), lambda i: (i, 0)),     # per-tile flat ids
            pl.BlockSpec((TB * W, 2), lambda i: (i, 0)),     # per-tile bag bounds
            pl.BlockSpec((V, E), lambda i: (0, 0)),          # table resident in VMEM
        ],
        out_specs=pl.BlockSpec((TB, W * E), lambda i: (i, 0)),  # lane-dense output slab
        compiler_params=pltpu.CompilerParams(
            dimension_semantics=("parallel",)),
    )(idx_flat, bounds_bd, table)

    return out.reshape(B, W, E)


def embedding_forward_ref(indices, offsets, table):
    """Pure-JAX reference (exact gather + masked segment mean), for correctness check."""
    B, L = indices.shape
    W = offsets.shape[1]
    ends = jnp.concatenate(
        [offsets[:, 1:], jnp.full((B, 1), L, dtype=offsets.dtype)], axis=1)
    pos = jnp.arange(L)
    assign = (pos[None, None, :] >= offsets[:, :, None]) & \
             (pos[None, None, :] < ends[:, :, None])                 # (B, W, L)
    gathered = table[indices]                                        # (B, L, E)
    masked = jnp.where(assign[..., None], gathered[:, None, :, :], 0.0)  # (B, W, L, E)
    sums = masked.sum(axis=2)                                        # (B, W, E)
    cnt = assign.sum(axis=2).astype(table.dtype)[..., None]          # (B, W, 1)
    return jnp.where(cnt > 0, sums / jnp.maximum(cnt, 1.0), 0.0)


if __name__ == "__main__":
    # Small shapes consistent with the module: parameters.embedding_size = 32
    VOCAB = 64
    EMBED = 32
    BATCH = 2
    WINDOW = 4
    SEQ = 8
    L = WINDOW * SEQ

    key = jax.random.PRNGKey(0)
    k_w, k_i = jax.random.split(key)

    # Deterministic parameter init matching init_weights(): uniform(-0.5, 0.5)
    table = jax.random.uniform(k_w, (VOCAB, EMBED), jnp.float32,
                               minval=-0.5, maxval=0.5)

    # Flat indices per batch element and equally-spaced bag offsets (W bags of SEQ).
    indices = jax.random.randint(k_i, (BATCH, L), 0, VOCAB, dtype=jnp.int32)
    offsets = jnp.tile(jnp.arange(0, L, SEQ, dtype=jnp.int32)[None, :], (BATCH, 1))

    out = embedding_forward(indices, offsets, table)
    out = jax.block_until_ready(out)

    ref = embedding_forward_ref(indices, offsets, table)
    assert out.shape == (BATCH, WINDOW, EMBED)
    np.testing.assert_allclose(np.asarray(out), np.asarray(ref), rtol=1e-5, atol=1e-5)

    print("KERNEL_OK")
</pallas_src>

<mosaic_0001>
module attributes {stable_mosaic.version = 11 : i64} {
  func.func @_embedding_bag_kernel(%arg0: i32, %arg1: memref<64x1xi32, #tpu.memory_space<vmem>>, %arg2: memref<8x2xi32, #tpu.memory_space<vmem>>, %arg3: memref<64x32xf32, #tpu.memory_space<vmem>>, %arg4: memref<2x128xf32, #tpu.memory_space<vmem>>) attributes {dimension_semantics = [#tpu.dimension_semantics<parallel>], iteration_bounds = array<i64: 1>, scalar_prefetch = 0 : i64, scratch_operands = 0 : i64, tpu.core_type = #tpu.core_type<tc>, window_params = [{transform_indices = @transform_0, window_bounds = array<i64: 64, 1>}, {transform_indices = @transform_1, window_bounds = array<i64: 8, 2>}, {pipeline_mode = #tpu.pipeline_mode<synchronous>, transform_indices = @transform_2, window_bounds = array<i64: 64, 32>}, {transform_indices = @transform_3, window_bounds = array<i64: 2, 128>}]} {
    %c0 = arith.constant 0 : index
    %c0_0 = arith.constant 0 : index
    %0 = vector.load %arg2[%c0, %c0_0] : memref<8x2xi32, #tpu.memory_space<vmem>>, vector<8x1xi32>
    %c0_1 = arith.constant 0 : index
    %c1 = arith.constant 1 : index
    %1 = vector.load %arg2[%c0_1, %c1] : memref<8x2xi32, #tpu.memory_space<vmem>>, vector<8x1xi32>
    %2 = tpu.iota {dimensions = array<i32: 1>} : vector<1x64xi32>
    %3 = vector.broadcast %2 : vector<1x64xi32> to vector<8x64xi32>
    %4 = vector.broadcast %0 : vector<8x1xi32> to vector<8x64xi32>
    %5 = arith.cmpi sge, %3, %4 : vector<8x64xi32>
    %6 = vector.broadcast %2 : vector<1x64xi32> to vector<8x64xi32>
    %7 = vector.broadcast %1 : vector<8x1xi32> to vector<8x64xi32>
    %8 = arith.cmpi slt, %6, %7 : vector<8x64xi32>
    %9 = arith.andi %5, %8 : vector<8x64xi1>
    %10 = arith.extui %9 : vector<8x64xi1> to vector<8x64xi32>
    %11 = arith.sitofp %10 : vector<8x64xi32> to vector<8x64xf32>
    %12 = arith.truncf %11 : vector<8x64xf32> to vector<8x64xbf16>
    %13 = tpu.iota {dimensions = array<i32: 1>} : vector<1x64xi32>
    %c0_2 = arith.constant 0 : index
    %c0_3 = arith.constant 0 : index
    %14 = vector.load %arg1[%c0_2, %c0_3] : memref<64x1xi32, #tpu.memory_space<vmem>>, vector<64x1xi32>
    %15 = vector.broadcast %14 : vector<64x1xi32> to vector<64x64xi32>
    %16 = vector.broadcast %13 : vector<1x64xi32> to vector<64x64xi32>
    %17 = arith.cmpi eq, %15, %16 : vector<64x64xi32>
    %18 = arith.extui %17 : vector<64x64xi1> to vector<64x64xi32>
    %19 = arith.sitofp %18 : vector<64x64xi32> to vector<64x64xf32>
    %20 = arith.truncf %19 : vector<64x64xf32> to vector<64x64xbf16>
    %cst = arith.constant dense<0.000000e+00> : vector<8x64xf32>
    %21 = tpu.matmul %12, %20, %cst {dimension_numbers = #tpu.dot_dimension_numbers<[1], [0], [0], [1], [0, 0, 1, 1], [], []>} : vector<8x64xbf16>, vector<64x64xbf16>, vector<8x64xf32> -> vector<8x64xf32>
    %c0_4 = arith.constant 0 : index
    %c0_5 = arith.constant 0 : index
    %22 = vector.load %arg3[%c0_4, %c0_5] : memref<64x32xf32, #tpu.memory_space<vmem>>, vector<64x32xf32>
    %cst_6 = arith.constant dense<0.000000e+00> : vector<8x32xf32>
    %23 = tpu.matmul %21, %22, %cst_6 {dimension_numbers = #tpu.dot_dimension_numbers<[1], [0], [0], [1], [0, 0, 1, 1], [], []>} : vector<8x64xf32>, vector<64x32xf32>, vector<8x32xf32> -> vector<8x32xf32>
    %24 = arith.subi %1, %0 : vector<8x1xi32>
    %25 = arith.sitofp %24 : vector<8x1xi32> to vector<8x1xf32>
    %cst_7 = arith.constant 0.000000e+00 : f32
    %26 = vector.broadcast %cst_7 : f32 to vector<8x1xf32>
    %27 = arith.cmpf ogt, %25, %26 : vector<8x1xf32>
    %cst_8 = arith.constant 1.000000e+00 : f32
    %28 = vector.broadcast %cst_8 : f32 to vector<8x1xf32>
    %29 = arith.maximumf %25, %28 : vector<8x1xf32>
    %cst_9 = arith.constant 1.000000e+00 : f32
    %30 = vector.broadcast %cst_9 : f32 to vector<8x1xf32>
    %31 = arith.divf %30, %29 : vector<8x1xf32>
    %cst_10 = arith.constant 0.000000e+00 : f32
    %32 = vector.broadcast %cst_10 : f32 to vector<8x1xf32>
    %33 = arith.select %27, %31, %32 : vector<8x1xi1>, vector<8x1xf32>
    %34 = vector.broadcast %33 : vector<8x1xf32> to vector<8x32xf32>
    %35 = arith.mulf %23, %34 : vector<8x32xf32>
    %36 = vector.extract_strided_slice %35 {offsets = [0, 0], sizes = [2, 32], strides = [1, 1]} : vector<8x32xf32> to vector<2x32xf32>
    %37 = vector.extract_strided_slice %35 {offsets = [2, 0], sizes = [2, 32], strides = [1, 1]} : vector<8x32xf32> to vector<2x32xf32>
    %38 = vector.extract_strided_slice %35 {offsets = [4, 0], sizes = [2, 32], strides = [1, 1]} : vector<8x32xf32> to vector<2x32xf32>
    %39 = vector.extract_strided_slice %35 {offsets = [6, 0], sizes = [2, 32], strides = [1, 1]} : vector<8x32xf32> to vector<2x32xf32>
    %40 = tpu.concatenate %36, %37, %38, %39 in 1 : vector<2x32xf32>, vector<2x32xf32>, vector<2x32xf32>, vector<2x32xf32> -> vector<2x128xf32>
    %c0_11 = arith.constant 0 : index
    %c0_12 = arith.constant 0 : index
    %41 = vector.load %arg4[%c0_11, %c0_12] : memref<2x128xf32, #tpu.memory_space<vmem>>, vector<2x128xf32>
    tpu.vector_store %arg4[%c0_11, %c0_12], %40 {strides = array<i32>} : memref<2x128xf32, #tpu.memory_space<vmem>>, vector<2x128xf32>,
    return
  }
  func.func @transform_0(%arg0: i32) -> (i32, i32) {
    %c0_i32 = arith.constant 0 : i32
    %c0_i32_0 = arith.constant 0 : i32
    return %arg0, %c0_i32 : i32, i32
  }
  func.func @transform_1(%arg0: i32) -> (i32, i32) {
    %c0_i32 = arith.constant 0 : i32
    %c0_i32_0 = arith.constant 0 : i32
    return %arg0, %c0_i32 : i32, i32
  }
  func.func @transform_2(%arg0: i32) -> (i32, i32) {
    %c0_i32 = arith.constant 0 : i32
    %c0_i32_0 = arith.constant 0 : i32
    %c0_i32_1 = arith.constant 0 : i32
    return %c0_i32, %c0_i32_0 : i32, i32
  }
  func.func @transform_3(%arg0: i32) -> (i32, i32) {
    %c0_i32 = arith.constant 0 : i32
    %c0_i32_0 = arith.constant 0 : i32
    return %arg0, %c0_i32 : i32, i32
  }
}

</mosaic_0001>

<bundles_post_ra>
// kernel: tpu_custom_call.1
= control target key start
LH: loop header
LB: loop body
LE: loop exit
PB: predicated region body
PF: predicated region fallthrough
CT: control target
= control target key end

     0   :  { %v368_v2 = vmov 0   ;;  %s476_s0 = inlined_call_operand.vmem [shape: s32[64,1], index: 0, kind: input, shape index: {}]   ;;  %s477_s1 = inlined_call_operand.vmem [shape: s32[8,2], index: 1, kind: input, shape index: {}]   ;;  %s478_s2 = inlined_call_operand.vmem [shape: f32[64,32], index: 2, kind: input, shape index: {}]   ;;  %s479_s3 = inlined_call_operand.hbm [shape: f32[2,128], index: 3, kind: output, shape index: {}]  }
   0x1   :  { %v35_v0 = vld [vmem:[%s476_s0 + $0x20] sm:$0xff]  ;;  %v37_v1 = vld [vmem:[%s476_s0 + $0x30] sm:$0xff]  ;;  %339 = vset.pattern.permute.xlu1 %v368_v2  ;;  %338 = vset.pattern.permute.xlu0 %v368_v2  ;;  %v36_v3 = vld [vmem:[%s476_s0 + $0x28] sm:$0xff] }
   0x2   :  { %52 = vperm.xlu1 %339, %v35_v0   ;;  %58 = vperm.xlu0 %338, %v37_v1   ;;  %v38_v4 = vld [vmem:[%s476_s0 + $0x38] sm:$0xff] }
   0x3   :  { %8 = vsyncpa [#allocation3], 0  ;;  %v369_v5 = vmov 0.0   ;;  %v34_v6 = vld [vmem:[%s476_s0 + $0x18] sm:$0xff]  ;;  %v33_v7 = vld [vmem:[%s476_s0 + $0x10] sm:$0xff]  ;;  %v370_v9 = vmov 1   ;;  %v17_v19 = vlaneseq }
   0x4   :  { %297 = vmatprep.subr.bf16.mxu0 %v369_v5  ;;  %309 = vmatprep.subr.mxu1 %v369_v5  ;;  %v421_v8 = vld [vmem:[%s477_s1] sm:$0xff]  ;;  %v32_v11 = vld [vmem:[%s476_s0 + $0x8] sm:$0xff]  ;;  %vm371_vm0 = vmmov 0   ;;  %v142_v12 = vld [vmem:[%s478_s2 + $0x38] sm:$0xff]  ;;  %s372_s6 = smov 1   ;;  %s375_s18 = smov 32  }
   0x5   :  { %v31_v10 = vld [vmem:[%s476_s0] sm:$0xff]  ;;  %305 = vmatprep.mubr.msk.bf16.mxu0 %vm371_vm0, %v369_v5  ;;  %325 = vmatprep.mubr.msk.f32.mxu1 %vm371_vm0, %v369_v5  ;;  %v141_v13 = vld [vmem:[%s478_s2 + $0x30] sm:$0xff]  ;;  %v140_v14 = vld [vmem:[%s478_s2 + $0x28] sm:$0xff]  ;;  %v18_v22 = vand.u32 127, %v17_v19  ;;  %v373_v25 = vmov 1.0|1.0  }
   0x6   :  { %55 = vperm.xlu1 %339, %v36_v3   ;;  %61 = vperm.xlu0 %338, %v38_v4   ;;  %v139_v15 = vld [vmem:[%s478_s2 + $0x20] sm:$0xff]  ;;  %v138_v16 = vld [vmem:[%s478_s2 + $0x18] sm:$0xff]  ;;  %v137_v17 = vld [vmem:[%s478_s2 + $0x10] sm:$0xff]  ;;  %vm91_vm0 = vcmask 523264   ;;  %s376_s19 = smov 96   ;;  %s377_s20 = smov [#allocation2]  }
   0x7   :  { %310 = vmatpush3.msra.mxu1 %v142_v12  ;;  %v136_v18 = vld [vmem:[%s478_s2 + $0x8] sm:$0xff]  ;;  %v135_v34 = vld [vmem:[%s478_s2] sm:$0xff]  ;;  %s374_s2 = smov 64   ;;  %s256_s21 = sshll.u32 %s377_s20, 4  ;;  %s257_s21 = int_to_ptr.vmem [resolvable:$true] %s256_s21 }
   0x8   :  { %311 = vmatprep.subr.mxu1 %v369_v5  ;;  %s346_s22 = scalar_lea.vmem %s257_s21, 32  ;;  %p351_p1 = scmp.lt.s32.totalorder %s257_s21, %s257_s21 }
   0x9   :  { %312 = vmatpush3.msra.mxu1 %v141_v13  ;;  %p347_p0 = scmp.ne.s32.totalorder %s257_s21, %s346_s22  ;;  %p352_p2 = scmp.lt.s32.totalorder %s346_s22, %s346_s22 }
   0xa   :  { %49 = vperm.xlu1 %339, %v34_v6   ;;  %46 = vperm.xlu0 %338, %v33_v7  }
   0xb   :  { %313 = vmatprep.subr.mxu1 %v369_v5  ;;  %p353_p3 = por %p352_p2, %p351_p1 }
   0xc   :  { %314 = vmatpush3.msra.mxu1 %v140_v14 }
   0xd   :  { %315 = vmatprep.subr.mxu1 %v369_v5  ;;  %p354_p4 = pnand %p353_p3, %p347_p0 }
   0xe   :  { %340 = vset.pattern.permute.xlu1 %v370_v9  ;;  %20 = vperm.xlu0 %338, %v421_v8  }
   0xf   :  { %24 = vperm.xlu1 %340, %v421_v8   ;;  %316 = vmatpush3.msra.mxu1 %v139_v15 }
  0x10   :  { %317 = vmatprep.subr.mxu1 %v369_v5 }
  0x11   :  { %318 = vmatpush3.msra.mxu1 %v138_v16 }
  0x12   :  { %40 = vperm.xlu0 %338, %v31_v10   ;;  %319 = vmatprep.subr.mxu1 %v369_v5 }
  0x13   :  { %341 = vset.pattern.permute.xlu1 %v368_v2  ;;  %320 = vmatpush3.msra.mxu1 %v137_v17 }
  0x14   :  { %43 = vperm.xlu1 %341, %v32_v11   ;;  %321 = vmatprep.subr.mxu1 %v369_v5 }
  0x15   :  { %322 = vmatpush3.msra.mxu1 %v136_v18 }
  0x16   :  { %216 = vrot.lane.b32.xlu0 %v421_v8, %s372_s6  ;;  %323 = vmatprep.subr.mxu1 %v369_v5 }
  0x17   :  { %343 = vset.pattern.permute.xlu0 %v370_v9  ;;  %324 = vmatpush3.msra.mxu1 %v135_v34 }
  0x18   :  { %342 = vset.pattern.permute.xlu1 %v370_v9 }
  0x7d   :  { %v53_v20 = vpop.permute.xlu1 %52  ;;  %v59_v21 = vpop.permute.xlu0 %58 }
  0x7e   :  { %vm69_vm2 = vcmp.eq.s32.totalorder %v59_v21, %v18_v22  ;;  %vm67_vm5 = vcmp.eq.s32.totalorder %v53_v20, %v18_v22 }
  0x81   :  { %v56_v23 = vpop.permute.xlu1 %55  ;;  %v62_v24 = vpop.permute.xlu0 %61 }
  0x82   :  { %vm70_vm1 = vcmp.eq.s32.totalorder %v62_v24, %v18_v22  ;;  %vm68_vm4 = vcmp.eq.s32.totalorder %v56_v23, %v18_v22 }
  0x83   :  { %vm273_vm3 = vmpackc.low %vm70_vm1, %vm69_vm2  ;;  %vm244_vm2 = vcmask 261120  }
  0x84   :  { %298 = vmatpush3.bf16.msk.msra.mxu0 %vm273_vm3, %v373_v25  ;;  %vm275_vm6 = vmpackc.low %vm68_vm4, %vm67_vm5  ;;  %vm247_vm3 = vcmask 785408  }
  0x85   :  { %v50_v26 = vpop.permute.xlu1 %49  ;;  %v47_v27 = vpop.permute.xlu0 %46  ;;  %299 = vmatprep.subr.bf16.mxu0 %v369_v5 }
  0x86   :  { %vm66_vm7 = vcmp.eq.s32.totalorder %v50_v26, %v18_v22  ;;  %vm65_vm8 = vcmp.eq.s32.totalorder %v47_v27, %v18_v22 }
  0x87   :  { %vm277_vm11 = vmpackc.low %vm66_vm7, %vm65_vm8 }
  0x88   :  { %300 = vmatpush3.bf16.msk.msra.mxu0 %vm275_vm6, %v373_v25 }
  0x89   :  { %v21_v28 = vpop.permute.xlu0 %20  ;;  %301 = vmatprep.subr.bf16.mxu0 %v369_v5 }
  0x8a   :  { %vm22_vm9 = vcmp.ge.s32.totalorder %v18_v22, %v21_v28  ;;  %v25_v29 = vpop.permute.xlu1 %24 }
  0x8b   :  { %vm26_vm10 = vcmp.lt.s32.totalorder %v18_v22, %v25_v29 }
  0x8c   :  { %vm27_vm12 = vmand %vm22_vm9, %vm26_vm10  ;;  %302 = vmatpush3.bf16.msk.msra.mxu0 %vm277_vm11, %v373_v25 }
  0x8d   :  { %v41_v30 = vpop.permute.xlu0 %40  ;;  %303 = vmatprep.subr.bf16.mxu0 %v369_v5  ;;  %v264_v32 = vsel %vm27_vm12, 1.0, %v369_v5 }
  0x8e   :  { %vm63_vm13 = vcmp.eq.s32.totalorder %v41_v30, %v18_v22  ;;  %v30_v33 = vpack.c.bf16 %v264_v32, %v264_v32 }
  0x8f   :  { %v44_v31 = vpop.permute.xlu1 %43 }
  0x90   :  { %vm64_vm14 = vcmp.eq.s32.totalorder %v44_v31, %v18_v22 }
  0x91   :  { %vm279_vm15 = vmpackc.low %vm64_vm14, %vm63_vm13  ;;  %v217_v35 = vpop.permute.xlu0 %216 }
  0x92   :  { %304 = vmatpush3.bf16.msk.msra.mxu0 %vm279_vm15, %v373_v25  ;;  %v218_v36 = vsub.s32 %v421_v8, %v217_v35 }
  0x94   :  { %v219_v37 = vcvt.s32.f32 %v218_v36 }
  0x95   :  { %306 = vmatmul.mubr.msk.bf16.vlgmr.msra.gmra.mxu0 %vm91_vm0, %v30_v33 }
  0x96   :  { %v221_v38 = vmax.f32 %v219_v37, 1.0  ;;  %vm220_vm1 = vcmp.gt.f32.partialorder %v219_v37, 0.0 }
  0x98   :  { %344 = vrcp.f32 %v221_v38 }
  0xa5   :  { %v345_v39 = vpop.eup %344 }
  0xa6   :  { %v224_v40 = vsel %vm220_vm1, %v345_v39, 0.0 }
  0xa7   :  { %227 = vperm.xlu1 %342, %v224_v40  }
 0x122   :  { %v228_v45 = vpop.permute.xlu1 %227 }
 0x155   :  { %v129_v41 = vpop.f32.mrf.mxu0 }
 0x156   :  { %326 = vmatmul.mubr.msk.f32.vlgmr.msra.gmra.mxu1 %vm91_vm0, %v129_v41 }
 0x157   :  { %v307_v42 = vpop.f32.mrf.mxu0 }
 0x159   :  { %v132_v43 = vpop.f32.mrf.mxu0 }
 0x15b   :  { %v308_v44 = vpop.f32.mrf.mxu0 }
 0x216   :  { %v212_v46 = vpop.f32.mrf.mxu1 }
 0x217   :  { %v230_v47 = vmul.f32 %v228_v45, %v212_v46 }
 0x218   :  { %v327_v48 = vpop.f32.mrf.mxu1 }
 0x219   :  { %v236_v49 = vrot.slane %v230_v47, 4  ;;  %v232_v50 = vrot.slane %v230_v47, 2  ;;  %v240_v51 = vrot.slane %v230_v47, 6 }
 0x21b   :  { %237 = vrot.lane.b32.xlu1 %v236_v49, %s374_s2  ;;  %233 = vrot.lane.b32.xlu0 %v232_v50, %s375_s18 }
 0x21f   :  { %241 = vrot.lane.b32.xlu0 %v240_v51, %s376_s19 }
 0x28d   :  { %v234_v52 = vpop.permute.xlu0 %233  ;;  %v238_v53 = vpop.permute.xlu1 %237 }
 0x28e   :  { %v245_v54 = vsel %vm244_vm2, %v230_v47, %v234_v52 }
 0x28f   :  { %v246_v55 = vsel %vm91_vm0, %v245_v54, %v238_v53 }
 0x291   :  { %v242_v56 = vpop.permute.xlu0 %241 }
 0x292   :  { %v248_v57 = vsel %vm247_vm3, %v246_v55, %v242_v56 }
 0x293   :  { %249 = vst [vmem:[#allocation2] sm:$0x3] %v248_v57 }
 0x294   :  { %357 = shalt.err (!%p354_p4)
}
 0x295   :  { %259 = dma.vmem_to_hbm [thread:$0]  %s257_s21, 32, %s479_s3, [#allocation3]  }
 0x296   :  { %366 = dma.done.wait [#allocation3], 32  }
 0x297   :  { %367 = vsyncadd [#allocation3], 4294967264 }
 0x298   :  { %263 = vsyncpa [#allocation3], 1 }

</bundles_post_ra>
